<compile_context>
chip_gen: v6e
topology: v6e:2x2x1
jax: 0.10.0
libtpu: 0.0.40
codegen_flags: <defaults>
</compile_context>

<pallas_src>
import functools

import jax
import jax.numpy as jnp
from jax.experimental import pallas as pl
from jax.experimental.pallas import tpu as pltpu


def _dwconv_kernel(*refs, shift, has_halo):
    # refs (has_halo):  x, top_row, bot_row, weight, bias, out, acc_scratch
    # refs (no halo) :  x, weight, bias, out, acc_scratch
    if has_halo:
        x_ref, top_ref, bot_ref, w_ref, b_ref, o_ref, acc_ref = refs
    else:
        x_ref, w_ref, b_ref, o_ref, acc_ref = refs

    f32 = jnp.float32
    x = x_ref[0].astype(f32)          # (HS, W, CT)  or folded (HS, W*C)
    HS = x.shape[0]
    w = w_ref[...].astype(f32)        # (3, 3, L)
    bias = b_ref[...].astype(f32)     # (1, L)

    axis = 1                          # W-neighbour axis of the squeezed view
    size = x.shape[axis]

    def wshift(v):
        # Left/right W-neighbours via XLU rolls; wrapped edge column is zeroed
        # (reconstructs the 1-pixel zero pad), mask built from a small iota.
        coord = jax.lax.broadcasted_iota(jnp.int32, (1,) + v.shape[1:], axis)
        vl = jnp.where(coord < shift, 0.0,
                       pltpu.roll(v, shift=shift % size, axis=axis))
        vr = jnp.where(coord >= size - shift, 0.0,
                       pltpu.roll(v, shift=(size - shift) % size, axis=axis))
        return vl, vr

    def hconv(v, vl, vr, j):
        # Horizontal 3-tap conv with filter row j (f32 VPU, weights broadcast
        # over the leading dims).
        return vl * w[j, 0] + v * w[j, 1] + vr * w[j, 2]

    x_l, x_r = wshift(x)

    # Centre filter row + bias initialises the accumulator.
    acc_ref[...] = hconv(x, x_l, x_r, 1) + bias

    # Rows above/below *inside* the strip, accumulated via shifted ref slices
    # (no concatenated "top"/"bot" temporaries).
    if HS > 1:
        acc_ref[1:HS] += hconv(x[0:HS - 1], x_l[0:HS - 1], x_r[0:HS - 1], 0)
        acc_ref[0:HS - 1] += hconv(x[1:HS], x_l[1:HS], x_r[1:HS], 2)

    if has_halo:
        s = pl.program_id(2)
        last = pl.num_programs(2) - 1
        # 1-row halos from the neighbouring strips; zero at the image border.
        top = jnp.where(s == 0, 0.0, top_ref[0].astype(f32))      # (1, ...)
        bot = jnp.where(s == last, 0.0, bot_ref[0].astype(f32))   # (1, ...)
        t_l, t_r = wshift(top)
        b_l, b_r = wshift(bot)
        acc_ref[0:1] += hconv(top, t_l, t_r, 0)
        acc_ref[HS - 1:HS] += hconv(bot, b_l, b_r, 2)

    o_ref[0] = acc_ref[...].astype(o_ref.dtype)


def _choose_strip_rows(H, W, CT):
    """Largest divisor of H whose f32 strip tile stays around <= 2 MiB."""
    budget_rows = max(1, (2 * 1024 * 1024) // max(1, W * CT * 4))
    if H <= budget_rows:
        return H
    for hs in range(min(H - 1, budget_rows), 0, -1):
        if H % hs == 0:
            return hs
    return H


def dwconv(x, weight, bias, H, W, *, strip_rows=None):
    """Depthwise 3x3 conv, stride 1, pad 1 (DWConv.forward).

    x: (B, N, C) with N == H*W; weight: (3, 3, C); bias: (C,). Returns (B, N, C).
    weight[kh, kw, c] == torch Conv2d(C, C, 3, 1, 1, groups=C).weight[c, 0, kh, kw].
    """
    B, N, C = x.shape
    assert N == H * W
    itemsize = x.dtype.itemsize

    # Small C: fold (W, C) onto lanes so every store is lane-dense.
    fold = (C < 128) and (H * W * C * 4 <= 4 * 1024 * 1024)

    if fold:
        L = W * C
        xi = x.reshape(B, H, L)                       # free relayout
        wk = jnp.tile(weight, (1, 1, W))              # lane l = w*C + c -> weight[..., c]
        bk = jnp.tile(bias, W).reshape(1, L)
        HS = H                                        # single strip
        n_ct = 1
        shift = C
        x_block, halo_block = (1, HS, L), (1, 1, L)
        w_block, b_block = (3, 3, L), (1, L)
        out_shape = jax.ShapeDtypeStruct((B, H, L), x.dtype)
        acc_shape = (HS, L)

        def x_map(b, c, s): return (b, s, 0)
        top_map = bot_map = None
    else:
        CT = 128 if C % 128 == 0 else C               # lane-dense tiles when possible
        n_ct = C // CT
        xi = x.reshape(B, H, W, C)                    # free relayout, no pad
        wk = weight
        bk = bias.reshape(1, C)
        HS = strip_rows if strip_rows is not None else _choose_strip_rows(H, W, CT)
        assert 1 <= HS <= H and H % HS == 0
        shift = 1
        x_block, halo_block = (1, HS, W, CT), (1, 1, W, CT)
        w_block, b_block = (3, 3, CT), (1, CT)
        out_shape = jax.ShapeDtypeStruct((B, H, W, C), x.dtype)
        acc_shape = (HS, W, CT)

        def x_map(b, c, s): return (b, s, 0, c)
        def top_map(b, c, s): return (b, jnp.maximum(s * HS - 1, 0), 0, c)
        def bot_map(b, c, s): return (b, jnp.minimum(s * HS + HS, H - 1), 0, c)

    def w_map(b, c, s): return (0, 0, c)
    def b_map(b, c, s): return (0, c)

    n_strips = H // HS
    has_halo = n_strips > 1
    grid = (B, n_ct, n_strips)

    in_specs = [pl.BlockSpec(x_block, x_map)]
    args = [xi]
    if has_halo:
        in_specs += [pl.BlockSpec(halo_block, top_map),
                     pl.BlockSpec(halo_block, bot_map)]
        args += [xi, xi]
    in_specs += [pl.BlockSpec(w_block, w_map), pl.BlockSpec(b_block, b_map)]
    args += [wk, bk]

    # Explicit scoped-VMEM budget: double-buffered in/out + f32 scratch +
    # ~6 f32 temporaries per step, with headroom (clamped for v7x's 64 MiB).
    tile_elems = 1
    for d in x_block:
        tile_elems *= d
    working = 4 * tile_elems * itemsize + 7 * tile_elems * 4
    vmem_limit = int(min(max(2 * working, 32 * 1024 * 1024), 48 * 1024 * 1024))

    flops = int(2 * 9 * B * H * W * C)                # 9 MACs per output element
    bytes_accessed = int(
        (2.0 + (2.0 / HS if has_halo else 0.0)) * B * H * W * C * itemsize
        + wk.size * wk.dtype.itemsize + bk.size * bk.dtype.itemsize)
    cost = pl.CostEstimate(flops=flops, transcendentals=0,
                           bytes_accessed=bytes_accessed)

    out = pl.pallas_call(
        functools.partial(_dwconv_kernel, shift=shift, has_halo=has_halo),
        out_shape=out_shape,
        grid=grid,
        in_specs=in_specs,
        out_specs=pl.BlockSpec(x_block, x_map),
        scratch_shapes=[pltpu.VMEM(acc_shape, jnp.float32)],
        compiler_params=pltpu.CompilerParams(
            dimension_semantics=("parallel", "parallel", "parallel"),
            vmem_limit_bytes=vmem_limit),
        cost_estimate=cost,
    )(*args)

    return out.reshape(B, N, C)


def _reference_dwconv(x, weight, bias, H, W):
    """Pure-JAX reference (mirrors nn.Conv2d(dim, dim, 3, 1, 1, groups=dim))."""
    B, N, C = x.shape
    xi = x.reshape(B, H, W, C).astype(jnp.float32)
    xp = jnp.pad(xi, ((0, 0), (1, 1), (1, 1), (0, 0)))
    acc = jnp.zeros((B, H, W, C), jnp.float32)
    for dh in range(3):
        for dw in range(3):
            acc = acc + xp[:, dh:dh + H, dw:dw + W, :] * weight[dh, dw, :].astype(jnp.float32)
    acc = acc + bias.astype(jnp.float32)
    return acc.reshape(B, N, C).astype(x.dtype)


def _run_case(key, B, C, Hs, Ws, dtype=jnp.float32, strip_rows=None,
              atol=1e-5, rtol=1e-5):
    N = Hs * Ws
    kx, kw, kb = jax.random.split(key, 3)
    x = jax.random.normal(kx, (B, N, C), dtype=jnp.float32).astype(dtype)
    weight = (jax.random.normal(kw, (3, 3, C), dtype=jnp.float32) * 0.1).astype(dtype)
    bias = (jax.random.normal(kb, (C,), dtype=jnp.float32) * 0.1).astype(dtype)

    out = dwconv(x, weight, bias, Hs, Ws, strip_rows=strip_rows)
    jax.block_until_ready(out)

    ref = _reference_dwconv(x, weight, bias, Hs, Ws)
    assert out.shape == (B, N, C)
    assert jnp.allclose(out.astype(jnp.float32), ref.astype(jnp.float32),
                        atol=atol, rtol=rtol), (
        f"mismatch vs reference (C={C}, H={Hs}, W={Ws}, dtype={dtype}, "
        f"strips={strip_rows})")


if __name__ == "__main__":
    key = jax.random.PRNGKey(0)
    k1, k2, k3, k4 = jax.random.split(key, 4)

    # Small-C folded-lane path (lane-dense stores, single strip).
    _run_case(k1, B=2, C=32, Hs=8, Ws=8)
    # Channel-tiled path with H-strip tiling + 1-row halos (grid (2, 2, 4)).
    _run_case(k2, B=2, C=256, Hs=16, Ws=8, strip_rows=4)
    # Channel-tiled, two strips, larger spatial tile.
    _run_case(k3, B=1, C=128, Hs=16, Ws=16, strip_rows=8)
    # bf16 I/O (compute stays f32 in-kernel), single strip.
    _run_case(k4, B=1, C=128, Hs=8, Ws=8, dtype=jnp.bfloat16, atol=2e-2, rtol=2e-2)

    print("KERNEL_OK")
</pallas_src>

<mosaic_0001>
module attributes {stable_mosaic.version = 11 : i64} {
  func.func @_dwconv_kernel(%arg0: i32, %arg1: i32, %arg2: i32, %arg3: memref<1x8x256xf32, #tpu.memory_space<vmem>>, %arg4: memref<3x3x256xf32, #tpu.memory_space<vmem>>, %arg5: memref<1x256xf32, #tpu.memory_space<vmem>>, %arg6: memref<1x8x256xf32, #tpu.memory_space<vmem>>, %arg7: memref<8x256xf32, #tpu.memory_space<vmem>>) attributes {dimension_semantics = [#tpu.dimension_semantics<parallel>, #tpu.dimension_semantics<parallel>, #tpu.dimension_semantics<parallel>], iteration_bounds = array<i64: 2, 1, 1>, scalar_prefetch = 0 : i64, scratch_operands = 1 : i64, tpu.core_type = #tpu.core_type<tc>, window_params = [{transform_indices = @transform_0, window_bounds = array<i64: 1, 8, 256>}, {transform_indices = @transform_1, window_bounds = array<i64: 3, 3, 256>}, {transform_indices = @transform_2, window_bounds = array<i64: 1, 256>}, {transform_indices = @transform_3, window_bounds = array<i64: 1, 8, 256>}]} {
    %c0 = arith.constant 0 : index
    %c0_0 = arith.constant 0 : index
    %c0_1 = arith.constant 0 : index
    %0 = vector.load %arg3[%c0, %c0_0, %c0_1] : memref<1x8x256xf32, #tpu.memory_space<vmem>>, vector<1x8x256xf32>
    %1 = vector.shape_cast %0 : vector<1x8x256xf32> to vector<8x256xf32>
    %c0_2 = arith.constant 0 : index
    %c0_3 = arith.constant 0 : index
    %c0_4 = arith.constant 0 : index
    %2 = vector.load %arg4[%c0_2, %c0_3, %c0_4] : memref<3x3x256xf32, #tpu.memory_space<vmem>>, vector<3x3x256xf32>
    %c0_5 = arith.constant 0 : index
    %c0_6 = arith.constant 0 : index
    %3 = vector.load %arg5[%c0_5, %c0_6] : memref<1x256xf32, #tpu.memory_space<vmem>>, vector<1x256xf32>
    %4 = tpu.iota {dimensions = array<i32: 1>} : vector<1x256xi32>
    %c32_i32 = arith.constant 32 : i32
    %5 = vector.broadcast %c32_i32 : i32 to vector<1x256xi32>
    %6 = arith.cmpi slt, %4, %5 : vector<1x256xi32>
    %c32_i32_7 = arith.constant 32 : i32
    %7 = tpu.dynamic_rotate %1 by %c32_i32_7 dim 1 : vector<8x256xf32>, i32 -> vector<8x256xf32>
    %cst = arith.constant 0.000000e+00 : f32
    %8 = vector.shape_cast %6 : vector<1x256xi1> to vector<1x256xi1>
    %9 = vector.broadcast %8 : vector<1x256xi1> to vector<8x256xi1>
    %10 = vector.broadcast %cst : f32 to vector<8x256xf32>
    %11 = arith.select %9, %10, %7 : vector<8x256xi1>, vector<8x256xf32>
    %c224_i32 = arith.constant 224 : i32
    %12 = vector.broadcast %c224_i32 : i32 to vector<1x256xi32>
    %13 = arith.cmpi sge, %4, %12 : vector<1x256xi32>
    %c224_i32_8 = arith.constant 224 : i32
    %14 = tpu.dynamic_rotate %1 by %c224_i32_8 dim 1 : vector<8x256xf32>, i32 -> vector<8x256xf32>
    %cst_9 = arith.constant 0.000000e+00 : f32
    %15 = vector.shape_cast %13 : vector<1x256xi1> to vector<1x256xi1>
    %16 = vector.broadcast %15 : vector<1x256xi1> to vector<8x256xi1>
    %17 = vector.broadcast %cst_9 : f32 to vector<8x256xf32>
    %18 = arith.select %16, %17, %14 : vector<8x256xi1>, vector<8x256xf32>
    %19 = vector.extract_strided_slice %2 {offsets = [1, 0, 0], sizes = [1, 1, 256], strides = [1, 1, 1]} : vector<3x3x256xf32> to vector<1x1x256xf32>
    %20 = vector.shape_cast %19 : vector<1x1x256xf32> to vector<256xf32>
    %21 = vector.shape_cast %20 : vector<256xf32> to vector<1x256xf32>
    %22 = vector.broadcast %21 : vector<1x256xf32> to vector<8x256xf32>
    %23 = arith.mulf %11, %22 : vector<8x256xf32>
    %24 = vector.extract_strided_slice %2 {offsets = [1, 1, 0], sizes = [1, 1, 256], strides = [1, 1, 1]} : vector<3x3x256xf32> to vector<1x1x256xf32>
    %25 = vector.shape_cast %24 : vector<1x1x256xf32> to vector<256xf32>
    %26 = vector.shape_cast %25 : vector<256xf32> to vector<1x256xf32>
    %27 = vector.broadcast %26 : vector<1x256xf32> to vector<8x256xf32>
    %28 = arith.mulf %1, %27 : vector<8x256xf32>
    %29 = arith.addf %23, %28 : vector<8x256xf32>
    %30 = vector.extract_strided_slice %2 {offsets = [1, 2, 0], sizes = [1, 1, 256], strides = [1, 1, 1]} : vector<3x3x256xf32> to vector<1x1x256xf32>
    %31 = vector.shape_cast %30 : vector<1x1x256xf32> to vector<256xf32>
    %32 = vector.shape_cast %31 : vector<256xf32> to vector<1x256xf32>
    %33 = vector.broadcast %32 : vector<1x256xf32> to vector<8x256xf32>
    %34 = arith.mulf %18, %33 : vector<8x256xf32>
    %35 = arith.addf %29, %34 : vector<8x256xf32>
    %36 = vector.broadcast %3 : vector<1x256xf32> to vector<8x256xf32>
    %37 = arith.addf %35, %36 : vector<8x256xf32>
    %c0_10 = arith.constant 0 : index
    %c0_11 = arith.constant 0 : index
    %38 = vector.load %arg7[%c0_10, %c0_11] : memref<8x256xf32, #tpu.memory_space<vmem>>, vector<8x256xf32>
    tpu.vector_store %arg7[%c0_10, %c0_11], %37 {strides = array<i32>} : memref<8x256xf32, #tpu.memory_space<vmem>>, vector<8x256xf32>,
    %c1 = arith.constant 1 : index
    %c0_12 = arith.constant 0 : index
    %39 = vector.load %arg7[%c1, %c0_12] : memref<8x256xf32, #tpu.memory_space<vmem>>, vector<7x256xf32>
    %40 = vector.extract_strided_slice %1 {offsets = [0, 0], sizes = [7, 256], strides = [1, 1]} : vector<8x256xf32> to vector<7x256xf32>
    %41 = vector.extract_strided_slice %11 {offsets = [0, 0], sizes = [7, 256], strides = [1, 1]} : vector<8x256xf32> to vector<7x256xf32>
    %42 = vector.extract_strided_slice %18 {offsets = [0, 0], sizes = [7, 256], strides = [1, 1]} : vector<8x256xf32> to vector<7x256xf32>
    %43 = vector.extract_strided_slice %2 {offsets = [0, 0, 0], sizes = [1, 1, 256], strides = [1, 1, 1]} : vector<3x3x256xf32> to vector<1x1x256xf32>
    %44 = vector.shape_cast %43 : vector<1x1x256xf32> to vector<256xf32>
    %45 = vector.shape_cast %44 : vector<256xf32> to vector<1x256xf32>
    %46 = vector.broadcast %45 : vector<1x256xf32> to vector<7x256xf32>
    %47 = arith.mulf %41, %46 : vector<7x256xf32>
    %48 = vector.extract_strided_slice %2 {offsets = [0, 1, 0], sizes = [1, 1, 256], strides = [1, 1, 1]} : vector<3x3x256xf32> to vector<1x1x256xf32>
    %49 = vector.shape_cast %48 : vector<1x1x256xf32> to vector<256xf32>
    %50 = vector.shape_cast %49 : vector<256xf32> to vector<1x256xf32>
    %51 = vector.broadcast %50 : vector<1x256xf32> to vector<7x256xf32>
    %52 = arith.mulf %40, %51 : vector<7x256xf32>
    %53 = arith.addf %47, %52 : vector<7x256xf32>
    %54 = vector.extract_strided_slice %2 {offsets = [0, 2, 0], sizes = [1, 1, 256], strides = [1, 1, 1]} : vector<3x3x256xf32> to vector<1x1x256xf32>
    %55 = vector.shape_cast %54 : vector<1x1x256xf32> to vector<256xf32>
    %56 = vector.shape_cast %55 : vector<256xf32> to vector<1x256xf32>
    %57 = vector.broadcast %56 : vector<1x256xf32> to vector<7x256xf32>
    %58 = arith.mulf %42, %57 : vector<7x256xf32>
    %59 = arith.addf %53, %58 : vector<7x256xf32>
    %60 = arith.addf %39, %59 : vector<7x256xf32>
    %c1_13 = arith.constant 1 : index
    %c0_14 = arith.constant 0 : index
    %61 = vector.load %arg7[%c1_13, %c0_14] : memref<8x256xf32, #tpu.memory_space<vmem>>, vector<7x256xf32>
    tpu.vector_store %arg7[%c1_13, %c0_14], %60 {strides = array<i32>} : memref<8x256xf32, #tpu.memory_space<vmem>>, vector<7x256xf32>,
    %c0_15 = arith.constant 0 : index
    %c0_16 = arith.constant 0 : index
    %62 = vector.load %arg7[%c0_15, %c0_16] : memref<8x256xf32, #tpu.memory_space<vmem>>, vector<7x256xf32>
    %63 = vector.extract_strided_slice %1 {offsets = [1, 0], sizes = [7, 256], strides = [1, 1]} : vector<8x256xf32> to vector<7x256xf32>
    %64 = vector.extract_strided_slice %11 {offsets = [1, 0], sizes = [7, 256], strides = [1, 1]} : vector<8x256xf32> to vector<7x256xf32>
    %65 = vector.extract_strided_slice %18 {offsets = [1, 0], sizes = [7, 256], strides = [1, 1]} : vector<8x256xf32> to vector<7x256xf32>
    %66 = vector.extract_strided_slice %2 {offsets = [2, 0, 0], sizes = [1, 1, 256], strides = [1, 1, 1]} : vector<3x3x256xf32> to vector<1x1x256xf32>
    %67 = vector.shape_cast %66 : vector<1x1x256xf32> to vector<256xf32>
    %68 = vector.shape_cast %67 : vector<256xf32> to vector<1x256xf32>
    %69 = vector.broadcast %68 : vector<1x256xf32> to vector<7x256xf32>
    %70 = arith.mulf %64, %69 : vector<7x256xf32>
    %71 = vector.extract_strided_slice %2 {offsets = [2, 1, 0], sizes = [1, 1, 256], strides = [1, 1, 1]} : vector<3x3x256xf32> to vector<1x1x256xf32>
    %72 = vector.shape_cast %71 : vector<1x1x256xf32> to vector<256xf32>
    %73 = vector.shape_cast %72 : vector<256xf32> to vector<1x256xf32>
    %74 = vector.broadcast %73 : vector<1x256xf32> to vector<7x256xf32>
    %75 = arith.mulf %63, %74 : vector<7x256xf32>
    %76 = arith.addf %70, %75 : vector<7x256xf32>
    %77 = vector.extract_strided_slice %2 {offsets = [2, 2, 0], sizes = [1, 1, 256], strides = [1, 1, 1]} : vector<3x3x256xf32> to vector<1x1x256xf32>
    %78 = vector.shape_cast %77 : vector<1x1x256xf32> to vector<256xf32>
    %79 = vector.shape_cast %78 : vector<256xf32> to vector<1x256xf32>
    %80 = vector.broadcast %79 : vector<1x256xf32> to vector<7x256xf32>
    %81 = arith.mulf %65, %80 : vector<7x256xf32>
    %82 = arith.addf %76, %81 : vector<7x256xf32>
    %83 = arith.addf %62, %82 : vector<7x256xf32>
    %c0_17 = arith.constant 0 : index
    %c0_18 = arith.constant 0 : index
    %84 = vector.load %arg7[%c0_17, %c0_18] : memref<8x256xf32, #tpu.memory_space<vmem>>, vector<7x256xf32>
    tpu.vector_store %arg7[%c0_17, %c0_18], %83 {strides = array<i32>} : memref<8x256xf32, #tpu.memory_space<vmem>>, vector<7x256xf32>,
    %c0_19 = arith.constant 0 : index
    %c0_20 = arith.constant 0 : index
    %85 = vector.load %arg7[%c0_19, %c0_20] : memref<8x256xf32, #tpu.memory_space<vmem>>, vector<8x256xf32>
    %c0_21 = arith.constant 0 : index
    %c0_22 = arith.constant 0 : index
    %c0_23 = arith.constant 0 : index
    %86 = vector.load %arg6[%c0_21, %c0_22, %c0_23] : memref<1x8x256xf32, #tpu.memory_space<vmem>>, vector<1x8x256xf32>
    %87 = vector.shape_cast %86 : vector<1x8x256xf32> to vector<8x256xf32>
    %88 = vector.shape_cast %85 : vector<8x256xf32> to vector<1x8x256xf32>
    tpu.vector_store %arg6[%c0_21, %c0_22, %c0_23], %88 {strides = array<i32>} : memref<1x8x256xf32, #tpu.memory_space<vmem>>, vector<1x8x256xf32>,
    return
  }
  func.func @transform_0(%arg0: i32, %arg1: i32, %arg2: i32) -> (i32, i32, i32) {
    %c0_i32 = arith.constant 0 : i32
    %c0_i32_0 = arith.constant 0 : i32
    return %arg0, %arg2, %c0_i32 : i32, i32, i32
  }
  func.func @transform_1(%arg0: i32, %arg1: i32, %arg2: i32) -> (i32, i32, i32) {
    %c0_i32 = arith.constant 0 : i32
    %c0_i32_0 = arith.constant 0 : i32
    %c0_i32_1 = arith.constant 0 : i32
    return %c0_i32, %c0_i32_0, %arg1 : i32, i32, i32
  }
  func.func @transform_2(%arg0: i32, %arg1: i32, %arg2: i32) -> (i32, i32) {
    %c0_i32 = arith.constant 0 : i32
    %c0_i32_0 = arith.constant 0 : i32
    return %c0_i32, %arg1 : i32, i32
  }
  func.func @transform_3(%arg0: i32, %arg1: i32, %arg2: i32) -> (i32, i32, i32) {
    %c0_i32 = arith.constant 0 : i32
    %c0_i32_0 = arith.constant 0 : i32
    return %arg0, %arg2, %c0_i32 : i32, i32, i32
  }
}

</mosaic_0001>

<bundles_post_ra>
// kernel: tpu_custom_call.1
= control target key start
LH: loop header
LB: loop body
LE: loop exit
PB: predicated region body
PF: predicated region fallthrough
CT: control target
= control target key end

     0   :  { %8 = vsyncpa [#allocation4], 0  ;;  %s1179_s0 = inlined_call_operand.hbm [shape: f32[2,8,256], index: 0, kind: input, shape index: {}]   ;;  %s1180_s1 = inlined_call_operand.hbm [shape: f32[3,3,256], index: 1, kind: input, shape index: {}]   ;;  %s1181_s2 = inlined_call_operand.vmem [shape: f32[1,256], index: 2, kind: input, shape index: {}]   ;;  %s1182_s3 = inlined_call_operand.hbm [shape: f32[2,8,256], index: 3, kind: output, shape index: {}]  }
   0x1   :  { %10 = vsyncpa [#allocation4 + $0x1], 0 }
   0x2   :  { %11 = vsyncpa [#allocation7], 0 }
   0x3   :  { %12 = vsyncpa [#allocation5], 0 }
   0x4   :  { %14 = vsyncpa [#allocation5 + $0x1], 0  ;;  %s923_s12 = smov 0   ;;  %s925_s13 = smov 0  }
   0x5   :  { %s927_s14 = smov 0   ;;  %s929_s15 = smov 0  }
   0x6   :  { %s931_s16 = smov 0   ;;  %s933_s17 = smov 0  }
   0x7 LB: > { %s659_s18 = sadd.s32 4294967295, %s894_s17   ;;  %s660_s19 = sadd.s32 4294967294, %s894_s17   ;;  %s894_s17 = sphi %s933_s17, %s20_s17   ;;  %s890_s16 = sphi %s931_s16, %s1200_s16   ;;  %s886_s15 = sphi %s929_s15, %s1199_s15   ;;  %s882_s14 = sphi %s927_s14, %s1198_s14   ;;  %s878_s13 = sphi %s925_s13, %s1197_s13   ;;  %s874_s12 = sphi %s923_s12, %s1196_s12  }
   0x8   : > { %p61_p0 = scmp.ne.s32.totalorder %s878_s13, %s874_s12  ;;  %p957_p1 = scmp.eq.s32.totalorder %s659_s18, 0 }
   0x9   : > { %p961_p2 = scmp.eq.s32.totalorder %s659_s18, 1  ;;  %p145_p3 = scmp.eq.s32.totalorder %s660_s19, 1 }
   0xa   : > { %p967_p4 = por %p957_p1, %p61_p0  ;;  %p661_p5 = scmp.ge.s32.totalorder %s894_s17, 1 }
   0xb   : > { %p972_p6 = por %p145_p3, %p61_p0  ;;  %p152_p7 = scmp.lt.s32.totalorder %s894_s17, 3 }
   0xc   : > { %s1186_s22 = scalar_select %p967_p4, 1, 0 }
   0xd   : > { %s1187_s23 = scalar_select %p972_p6, 1, 0 }
   0xe   : > { %p977_p8 = pnand %p661_p5, %p152_p7  ;;  %s896_s25 = smov [#allocation6]  }
   0xf   : > { %s167_s26 = sshll.u32 %s896_s25, 4  ;;  %s39_s28 = sadd.s32 1, %s890_s16  ;;  %s168_s26 = int_to_ptr.vmem [resolvable:$true] %s167_s26 }
  0x10   : > { %p687_p9 = pneg %p977_p8  ;;  %s767_s29 = scalar_lea.vmem %s168_s26, 384 }
  0x11   : > { %p768_p13 = scmp.ne.s32.totalorder %s168_s26, %s767_s29  ;;  %p775_p5 = scmp.lt.s32.totalorder %s168_s26, %s168_s26 }
  0x12   : > { %p986_p11 = pnand %p687_p9, %p957_p1  ;;  %p776_p7 = scmp.lt.s32.totalorder %s767_s29, %s767_s29 }
  0x14   : > { %p758_p12 = pneg %p986_p11  ;;  %p777_p6 = por %p776_p7, %p775_p5 }
  0x16   : > { %p770_p0 = pnand %p768_p13, %p758_p12 }
  0x18   : > { %p771_p3 = pneg %p770_p0 }
  0x1a   : > { %p778_p4 = pnand %p777_p6, %p771_p3 }
  0x1c   : > { %781 = shalt.err (!%p778_p4)
}
  0x1d   : > { %s897_s30 = smov 128   ;;  %s898_s4 = smov 8  }
  0x1e   : > { %690 = dma.hbm_to_vmem [thread:$0]  (!%p986_p11), %s1180_s1, 384, %s168_s26, [#allocation7], %s897_s30, %s897_s30, %s898_s4  }
  0x1f   : > { %p41_p6 = scmp.ge.s32.totalorder %s39_s28, 2  ;;  %s48_s7 = sadd.s32 1, %s882_s14 }
  0x20   : > { %p55_p4 = scmp.ne.s32.totalorder %s882_s14, %s878_s13  ;;  %p56_p9 = scmp.eq.s32.totalorder %s894_s17, 0 }
  0x21   : > { %s1202_s28 = smov (%p41_p6, %s39_s28), 0  ;;  %p700_p0 = scmp.lt.s32.totalorder %s894_s17, 2 }
  0x22   : > { %p1004_p12 = por %p56_p9, %p55_p4  ;;  %p1010_p13 = por %p961_p2, %p55_p4 }
  0x23   : > { %s43_s10 = ssub.s32 %s890_s16, %s1202_s28  ;;  %s189_s11 = sand.u32 1, %s882_s14  }
  0x24   : > { %p46_p11 = scmp.eq.s32.totalorder %s43_s10, 0  ;;  %s665_s18 = sshll.u32 %s189_s11, 4 }
  0x25   : > { %s677_s25 = sshll.u32 %s890_s16, 8  ;;  %s193_s30 = scalar_lea.vmem [#allocation3], %s665_s18 }
  0x26   : > { %s1019_s19 = scalar_select %p46_p11, %s882_s14, %s48_s7  }
  0x27   : > { %s201_s29 = scalar_lea.hbm %s1179_s0, %s677_s25  ;;  %s203_s4 = sshll.u32 %s193_s30, 4  ;;  %s204_s4 = int_to_ptr.vmem [resolvable:$true] %s203_s4 }
  0x28   : > { %p1027_p2 = pnand %p700_p0, %p1004_p12  ;;  %s190_s5 = scalar_lea.sflag [#allocation4], %s189_s11 }
  0x29   : > { %s795_s6 = scalar_lea.vmem %s204_s4, 256  ;;  %s899_s7 = smov [#allocation3]  }
  0x2a   : > { %p784_p3 = pneg %p1027_p2  ;;  %p796_p5 = scmp.ne.s32.totalorder %s204_s4, %s795_s6 }
  0x2b   : > { %s800_s10 = sshll.u32 %s899_s7, 4  ;;  %s801_s10 = int_to_ptr.vmem [resolvable:$false] %s800_s10 }
  0x2c   : > { %p798_p7 = pnand %p796_p5, %p784_p3  ;;  %s802_s25 = scalar_lea.vmem %s801_s10, 512 }
  0x2d   : > { %p803_p4 = scmp.lt.s32.totalorder %s204_s4, %s801_s10  ;;  %p804_p9 = scmp.lt.s32.totalorder %s802_s25, %s795_s6 }
  0x2e   : > { %p799_p6 = pneg %p798_p7 }
  0x2f   : > { %p805_p11 = por %p804_p9, %p803_p4 }
  0x31   : > { %p806_p10 = pnand %p805_p11, %p799_p6 }
  0x33   : > { %809 = shalt.err (!%p806_p10)
}
  0x34   : > { %694 = dma.hbm_to_vmem [thread:$0]  (!%p1027_p2), %s201_s29, 256, %s204_s4, %s190_s5  }
  0x35   : > { %212 = sbr.rel (%p977_p8) target bundleno = 232 (0xe8), region = 32  ;;  %s1038_s8 = sand.u32 (!%p977_p8), 1, %s878_s13  }
  0x36   : > { %s669_s11 = sshll.u32 (!%p977_p8), %s1038_s8, 4  ;;  %s215_s18 = scalar_lea.sflag (!%p977_p8), [#allocation4], %s1038_s8 }
  0x37   : > { %s218_s26 = scalar_lea.vmem (!%p977_p8), [#allocation3], %s669_s11  ;;  %p1193_p12 = scmp.ne.s32.totalorder (!%p977_p8), %s1186_s22, 0 }
  0x3a   : > { %861 = dma.done.wait (%p1193_p12), %s215_s18, 256  }
  0x3b   : > { %863 = vsyncadd (%p1193_p12), %s215_s18, 4294967040 }
  0x3c   : > { %865 = dma.done.wait (%p957_p1), [#allocation7], 384  }
  0x3d   : > { %867 = vsyncadd (%p957_p1), [#allocation7], 4294966912  ;;  %v1052_v0 = vld [vmem:[%s218_s26] sm:$0xff]  ;;  %s900_s24 = smov 96   ;;  %s901_s27 = smov 32   ;;  %v1056_v1 = vld [vmem:[%s218_s26 + $0x8] sm:$0xff]  ;;  %v261_v2 = vlaneseq }
  0x3e   : > { %280 = vrot.lane.b32.xlu1 %v1052_v0, %s900_s24  ;;  %266 = vrot.lane.b32.xlu0 %v1052_v0, %s901_s27  ;;  %v258_v7 = vld [vmem:[#allocation6 + $0x8] sm:$0x77]  ;;  %v257_v12 = vld [vmem:[#allocation6] sm:$0x77]  ;;  %v260_v39 = vld [vmem:[%s1181_s2] sm:$0x3] }
  0x3f   : > { %v295_v3 = vshrl.u32 %v261_v2, 7  ;;  %v262_v4 = vand.u32 127, %v261_v2  ;;  %v259_v50 = vld [vmem:[#allocation6 + $0x10] sm:$0x77]  ;;  %s678_s29 = sshll.u32 %s886_s15, 8  ;;  %s248_s30 = scalar_lea.vmem [#allocation8], %s669_s11 }
  0x40   : > { %s548_s4 = sshll.u32 %s248_s30, 4  ;;  %s1131_s6 = scalar_lea.hbm %s1182_s3, %s678_s29  ;;  %s1133_s4 = int_to_ptr.vmem [resolvable:$true] %s548_s4 }
  0x41   : > { %v1060_v5 = vsub.s32 1, %v295_v3  ;;  %v1062_v6 = vsub.s32 5, %v295_v3  ;;  %v1064_v8 = vsub.s32 0, %v295_v3  ;;  %v1066_v9 = vsub.s32 2, %v295_v3  ;;  %s532_s7 = scalar_lea.sflag [#allocation5], %s1038_s8  ;;  %s810_s10 = scalar_lea.vmem %s1133_s4, 256 }
  0x42   : > { %282 = vrot.lane.b32.xlu1 %v1056_v1, %s900_s24  ;;  %268 = vrot.lane.b32.xlu0 %v1056_v1, %s901_s27  ;;  %v1068_v10 = vsub.s32 6, %v295_v3  ;;  %v1070_v11 = vsub.s32 4, %v295_v3  ;;  %v263_v13 = vadd.s32 128, %v262_v4  ;;  %vm284_vm0 = vcmp.lt.s32.totalorder %v262_v4, 96  ;;  %p811_p1 = scmp.ne.s32.totalorder %s1133_s4, %s810_s10  ;;  %s902_s15 = smov [#allocation8]  }
  0x43   : > { %v317_v14 = vrot.slane %v258_v7, %v1060_v5  ;;  %v321_v15 = vrot.slane %v258_v7, %v1062_v6  ;;  %v339_v16 = vrot.slane %v258_v7, %v1066_v9  ;;  %v297_v18 = vrot.slane %v258_v7, %v1064_v8  ;;  %s814_s25 = sshll.u32 %s902_s15, 4  ;;  %s815_s25 = int_to_ptr.vmem [resolvable:$false] %s814_s25 }
  0x44   : > { %v343_v17 = vrot.slane %v258_v7, %v1068_v10  ;;  %v301_v21 = vrot.slane %v258_v7, %v1070_v11  ;;  %v379_v22 = vrot.slane %v257_v12, %v1064_v8  ;;  %v383_v23 = vrot.slane %v257_v12, %v1070_v11  ;;  %p812_p8 = pnand %p811_p1, %p1010_p13  ;;  %s816_s11 = scalar_lea.vmem %s815_s25, 512 }
  0x45   : > { %v399_v24 = vrot.slane %v257_v12, %v1060_v5  ;;  %v403_v25 = vrot.slane %v257_v12, %v1062_v6  ;;  %vm279_vm1 = vcmp.ge.s32.totalorder %v263_v13, 224  ;;  %vm264_vm2 = vcmp.lt.s32.totalorder %v262_v4, 32  ;;  %p817_p0 = scmp.lt.s32.totalorder %s1133_s4, %s815_s25  ;;  %p818_p2 = scmp.lt.s32.totalorder %s816_s11, %s810_s10 }
  0x46   : > { %v327_v26 = vrot.slane %v317_v14, %v1060_v5  ;;  %v331_v27 = vrot.slane %v321_v15, %v1060_v5  ;;  %v349_v28 = vrot.slane %v339_v16, %v1066_v9  ;;  %v353_v29 = vrot.slane %v343_v17, %v1066_v9  ;;  %p813_p10 = pneg %p812_p8 }
  0x47   : > { %v425_v30 = vrot.slane %v257_v12, %v1068_v10  ;;  %v307_v31 = vrot.slane %v297_v18, %v1064_v8  ;;  %v311_v33 = vrot.slane %v301_v21, %v1064_v8  ;;  %v389_v34 = vrot.slane %v379_v22, %v1064_v8  ;;  %p819_p3 = por %p818_p2, %p817_p0 }
  0x48   : > { %v393_v35 = vrot.slane %v383_v23, %v1064_v8  ;;  %v409_v36 = vrot.slane %v399_v24, %v1060_v5  ;;  %v413_v40 = vrot.slane %v403_v25, %v1060_v5  ;;  %v333_v45 = vmul.f32 %v331_v27, %v1056_v1 }
  0x49   : > { %v332_v46 = vmul.f32 %v327_v26, %v1052_v0  ;;  %v421_v47 = vrot.slane %v257_v12, %v1066_v9  ;;  %v435_v48 = vrot.slane %v425_v30, %v1066_v9  ;;  %v362_v52 = vrot.slane %v260_v39, %v1064_v8  ;;  %p820_p5 = pnand %p819_p3, %p813_p10 }
  0x4a   : > { %v366_v56 = vrot.slane %v260_v39, %v1060_v5  ;;  %v415_v57 = vmul.f32 %v413_v40, %v1056_v1  ;;  %v414_v58 = vmul.f32 %v409_v36, %v1052_v0  ;;  %v456_v2 = vrot.slane %v259_v50, %v1064_v8 }
  0x4b   : > { %v431_v63 = vrot.slane %v421_v47, %v1066_v9  ;;  %v460_v3 = vrot.slane %v259_v50, %v1070_v11  ;;  %v476_v4 = vrot.slane %v259_v50, %v1060_v5  ;;  %v480_v7 = vrot.slane %v259_v50, %v1062_v6 }
  0x4c   : > { %v498_v6 = vrot.slane %v259_v50, %v1066_v9 }
  0x4d   : > { %v470_v22 = vrot.slane %v460_v3, %v1064_v8  ;;  %v486_v11 = vrot.slane %v476_v4, %v1060_v5  ;;  %v490_v23 = vrot.slane %v480_v7, %v1060_v5 }
  0x4f   : > { %v492_v27 = vmul.f32 %v490_v23, %v1056_v1 }
  0xb0   : > { %v281_v19 = vpop.permute.xlu1 %280  ;;  %v267_v20 = vpop.permute.xlu0 %266 }
  0xb4   : > { %v283_v32 = vpop.permute.xlu1 %282  ;;  %v269_v37 = vpop.permute.xlu0 %268 }
  0xb5   : > { %v286_v38 = vsel %vm284_vm0, %v283_v32, %v281_v19  ;;  %v270_v41 = vsel %vm264_vm2, %v267_v20, %v269_v37  ;;  %v271_v42 = vsel %vm264_vm2, %v269_v37, %v267_v20  ;;  %v285_v43 = vsel %vm284_vm0, %v281_v19, %v283_v32 }
  0xb6   : > { %v292_v44 = vsel %vm279_vm1, 0.0, %v286_v38  ;;  %v276_v49 = vsel %vm264_vm2, 0.0, %v271_v42  ;;  %v313_v54 = vmul.f32 %v311_v33, %v270_v41  ;;  %v354_v55 = vmul.f32 %v349_v28, %v285_v43 }
  0xb7   : > { %v355_v51 = vmul.f32 %v353_v29, %v292_v44  ;;  %v312_v53 = vmul.f32 %v307_v31, %v276_v49  ;;  %v394_v61 = vmul.f32 %v389_v34, %v276_v49  ;;  %v395_v62 = vmul.f32 %v393_v35, %v270_v41 }
  0xb8   : > { %v335_v60 = vadd.f32 %v333_v45, %v313_v54  ;;  %v437_v14 = vmul.f32 %v435_v48, %v292_v44  ;;  %v502_v19 = vrot.slane %v259_v50, %v1068_v10  ;;  %v466_v20 = vrot.slane %v456_v2, %v1064_v8 }
  0xb9   : > { %v334_v59 = vadd.f32 %v332_v46, %v312_v53  ;;  %v416_v17 = vadd.f32 %v414_v58, %v394_v61  ;;  %v417_v18 = vadd.f32 %v415_v57, %v395_v62  ;;  %v436_v21 = vmul.f32 %v431_v63, %v285_v43 }
  0xba   : > { %v357_v13 = vadd.f32 %v355_v51, %v335_v60  ;;  %v512_v26 = vrot.slane %v502_v19, %v1066_v9  ;;  %v471_v10 = vmul.f32 %v466_v20, %v276_v49  ;;  %v472_v28 = vmul.f32 %v470_v22, %v270_v41 }
  0xbb   : > { %v356_v12 = vadd.f32 %v354_v55, %v334_v59  ;;  %v438_v24 = vadd.f32 %v436_v21, %v416_v17  ;;  %v439_v25 = vadd.f32 %v437_v14, %v417_v18  ;;  %v491_v29 = vmul.f32 %v486_v11, %v1052_v0 }
  0xbc   : > { %v370_v16 = vadd.f32 %v366_v56, %v357_v13  ;;  %v508_v8 = vrot.slane %v498_v6, %v1066_v9  ;;  %v514_v32 = vmul.f32 %v512_v26, %v292_v44  ;;  %v494_v37 = vadd.f32 %v492_v27, %v472_v28 }
  0xbd   : > { %v369_v15 = vadd.f32 %v362_v52, %v356_v12  ;;  %v442_v30 = vrot.slane %v438_v24, 7  ;;  %v443_v31 = vrot.slane %v439_v25, 7  ;;  %v493_v36 = vadd.f32 %v491_v29, %v471_v10 }
  0xbe   : > { %372 = vst [vmem:[#allocation2 + $0x8] sm:$0xff] %v370_v16  ;;  %v513_v38 = vmul.f32 %v508_v8, %v285_v43  ;;  %v516_v39 = vadd.f32 %v514_v32, %v494_v37 }
  0xbf   : > { %371 = vst [vmem:[#allocation2] sm:$0xff] %v369_v15 }
  0xc0   : > { %v515_v1 = vadd.f32 %v513_v38, %v493_v36  ;;  %v520_v0 = vrot.slane %v516_v39, 1 }
  0xc2   : > { %v519_v40 = vrot.slane %v515_v1, 1 }
  0xc5   : > { %v374_v33 = vld [vmem:[#allocation2 + $0x8] sm:$0xfe] }
  0xc6   : > { %v373_v5 = vld [vmem:[#allocation2] sm:$0xfe]  ;;  %v447_v35 = vadd.f32 %v443_v31, %v374_v33 }
  0xc7   : > { %v446_v34 = vadd.f32 %v442_v30, %v373_v5 }
  0xc8   : > { %449 = vst [vmem:[#allocation2 + $0x8] sm:$0xfe] %v447_v35 }
  0xc9   : > { %448 = vst [vmem:[#allocation2] sm:$0xfe] %v446_v34 }
  0xcf   : > { %v451_v41 = vld [vmem:[#allocation2 + $0x8] sm:$0x7f] }
  0xd0   : > { %v450_v9 = vld [vmem:[#allocation2] sm:$0x7f]  ;;  %v524_v44 = vadd.f32 %v520_v0, %v451_v41 }
  0xd1   : > { %v523_v42 = vadd.f32 %v519_v40, %v450_v9 }
  0xd2   : > { %526 = vst [vmem:[#allocation2 + $0x8] sm:$0x7f] %v524_v44 }
  0xd3   : > { %525 = vst [vmem:[#allocation2] sm:$0x7f] %v523_v42 }
  0xd9   : > { %v528_v45 = vld [vmem:[#allocation2 + $0x8] sm:$0xff] }
  0xda   : > { %v527_v43 = vld [vmem:[#allocation2] sm:$0xff]  ;;  %530 = vst [vmem:[%s248_s30 + $0x8] sm:$0xff] %v528_v45 }
  0xdb   : > { %529 = vst [vmem:[%s248_s30] sm:$0xff] %v527_v43 }
  0xdc   : > { %823 = shalt.err (!%p820_p5)
}
  0xdd   : > { %s824_s18 = scalar_lea.hbm %s1131_s6, 256  ;;  %s828_s24 = scalar_lea.hbm %s1182_s3, 512 }
  0xde   : > { %p825_p7 = scmp.ne.s32.totalorder %s1131_s6, %s824_s18  ;;  %p829_p9 = scmp.lt.s32.totalorder %s1131_s6, %s1182_s3 }
  0xdf   : > { %p830_p11 = scmp.lt.s32.totalorder %s828_s24, %s824_s18 }
  0xe0   : > { %p826_p6 = pnand %p825_p7, %p1010_p13 }
  0xe1   : > { %p831_p12 = por %p830_p11, %p829_p9 }
  0xe2   : > { %p827_p4 = pneg %p826_p6 }
  0xe4   : > { %p832_p1 = pnand %p831_p12, %p827_p4 }
  0xe6   : > { %835 = shalt.err (!%p832_p1)
}
  0xe7   : > { %685 = dma.vmem_to_hbm [thread:$0]  (%p1010_p13), %s1133_s4, 256, %s1131_s6, %s532_s7  }
  0xe8 PF: > { %s560_s22 = sand.u32 1, %s874_s12   ;;  %p1194_p8 = scmp.ne.s32.totalorder %s1187_s23, 0 }
  0xe9   : > { %p1195_p10 = scmp.ge.s32.totalorder %s894_s17, 2  ;;  %s561_s29 = scalar_lea.sflag [#allocation5], %s560_s22 }
  0xeb   : > { %p696_p0 = pnand %p1195_p10, %p1194_p8 }
  0xed   : > { %p697_p2 = pneg %p696_p0 }
  0xef   : > { %869 = dma.done.wait (%p697_p2), %s561_s29, 256  }
  0xf0   : > { %871 = vsyncadd (%p697_p2), %s561_s29, 4294967040  ;;  %s20_s17 = sadd.s32 1, %s894_s17   ;;  %s1196_s12 = smov %s878_s13 }
  0xf1   : > { %p17_p3 = scmp.ge.s32.totalorder %s20_s17, 4   ;;  %s1197_s13 = smov %s882_s14 }
  0xf2   : > { %s1198_s14 = smov %s1019_s19  ;;  %s1199_s15 = smov %s890_s16 }
  0xf3   : > { %s1200_s16 = smov %s1202_s28  ;;  %19 = sbr.rel (!%p17_p3) target bundleno = 7 (0x7), region = 85 }
  0xf8   :  { %566 = vsyncpa [#allocation4], 1 }
  0xf9   :  { %568 = vsyncpa [#allocation4 + $0x1], 1 }
  0xfa   :  { %569 = vsyncpa [#allocation7], 1 }
  0xfb   :  { %570 = vsyncpa [#allocation5], 1 }
  0xfc   :  { %572 = vsyncpa [#allocation5 + $0x1], 1 }

</bundles_post_ra>
